<compile_context>
chip_gen: v6e
topology: v6e:2x2x1
jax: 0.10.0
libtpu: 0.0.40
codegen_flags: <defaults>
</compile_context>

<pallas_src>
import math
from functools import partial

import jax
import jax.numpy as jnp
from jax.experimental import pallas as pl
from jax.experimental.pallas import tpu as pltpu

_PARALLEL = pltpu.CompilerParams(dimension_semantics=("parallel",))


# ------------------------- helpers -------------------------

def _round_up(x, m):
    return ((x + m - 1) // m) * m


def _row_tile(m):
    # Large inputs: 256-row tiles keep the MXU fed and amortize per-step
    # pipeline overhead.  Small inputs: a single sublane-aligned block.
    return 256 if m >= 512 else _round_up(m, 8)


def _pad_rows(x, tm):
    m = x.shape[0]
    mp = _round_up(m, tm)
    if mp != m:
        x = jnp.pad(x, ((0, mp - m), (0, 0)))
    return x, m


# ------------------------- Pallas kernels -------------------------

def _linear_kernel(x_ref, w_ref, b_ref, o_ref):
    # y = x @ W + b   (bf16 MXU inputs, f32 accumulation)
    x = x_ref[...].astype(jnp.bfloat16)
    o_ref[...] = (
        jnp.dot(x, w_ref[...], preferred_element_type=jnp.float32) + b_ref[...]
    )


def _ln_linear_kernel(x_ref, g_ref, be_ref, w_ref, o_ref, *, eps):
    # y = LayerNorm(x) @ W   (bias added outside so window zero-padding keeps
    # exactly the PyTorch semantics: padded tokens become qkv(0) = bias)
    x = x_ref[...]
    mu = jnp.mean(x, axis=-1, keepdims=True)
    var = jnp.mean((x - mu) ** 2, axis=-1, keepdims=True)
    xn = (x - mu) * jax.lax.rsqrt(var + eps) * g_ref[...] + be_ref[...]
    o_ref[...] = jnp.dot(
        xn.astype(jnp.bfloat16), w_ref[...], preferred_element_type=jnp.float32
    )


def _ln_mlp_res_kernel(x_ref, g_ref, be_ref, w1_ref, b1_ref, w2_ref, b2_ref,
                       o_ref, *, eps):
    # y = x + fc2(gelu(fc1(LayerNorm(x))))   -- LN stats / gelu in f32
    x = x_ref[...]
    mu = jnp.mean(x, axis=-1, keepdims=True)
    var = jnp.mean((x - mu) ** 2, axis=-1, keepdims=True)
    xn = (x - mu) * jax.lax.rsqrt(var + eps) * g_ref[...] + be_ref[...]
    h = (
        jnp.dot(xn.astype(jnp.bfloat16), w1_ref[...],
                preferred_element_type=jnp.float32)
        + b1_ref[...]
    )
    h = jax.nn.gelu(h, approximate=False)  # matches nn.GELU() (exact erf)
    y = (
        jnp.dot(h.astype(jnp.bfloat16), w2_ref[...],
                preferred_element_type=jnp.float32)
        + b2_ref[...]
    )
    o_ref[...] = x + y


def _attn_kernel(q_ref, k_ref, v_ref, o_ref, *, scale):
    # A tile of GT (batch*window*head) groups per grid step, batched einsums.
    q = (q_ref[...] * scale).astype(jnp.bfloat16)   # pre-scale q (1/S the work)
    k = k_ref[...].astype(jnp.bfloat16)
    v = v_ref[...].astype(jnp.bfloat16)
    s = jnp.einsum("gqd,gkd->gqk", q, k, preferred_element_type=jnp.float32)
    m = jnp.max(s, axis=-1, keepdims=True)
    p = jnp.exp(s - m)
    denom = jnp.sum(p, axis=-1, keepdims=True)
    p = p * pl.reciprocal(denom, approx=True)
    o_ref[...] = jnp.einsum(
        "gqk,gkd->gqd", p.astype(jnp.bfloat16), v,
        preferred_element_type=jnp.float32,
    )
    # TODO(synk): for production global-attention sizes (S ~ 4096) convert this
    # to an online-softmax (flash) form tiled over KV to bound VMEM on v7x.


# ------------------------- Pallas wrappers -------------------------

def pallas_linear(x2d, w, b):
    tm = _row_tile(x2d.shape[0])
    xp, m = _pad_rows(x2d, tm)
    mp, kdim = xp.shape
    n = w.shape[1]
    out = pl.pallas_call(
        _linear_kernel,
        out_shape=jax.ShapeDtypeStruct((mp, n), jnp.float32),
        grid=(mp // tm,),
        in_specs=[
            pl.BlockSpec((tm, kdim), lambda i: (i, 0)),
            pl.BlockSpec((kdim, n), lambda i: (0, 0)),
            pl.BlockSpec((1, n), lambda i: (0, 0)),
        ],
        out_specs=pl.BlockSpec((tm, n), lambda i: (i, 0)),
        compiler_params=_PARALLEL,
    )(xp, w.astype(jnp.bfloat16), b.reshape(1, n))
    return out[:m]


def pallas_ln_linear(x2d, ln_w, ln_b, w, eps=1e-6):
    tm = _row_tile(x2d.shape[0])
    xp, m = _pad_rows(x2d, tm)
    mp, c = xp.shape
    n = w.shape[1]
    out = pl.pallas_call(
        partial(_ln_linear_kernel, eps=eps),
        out_shape=jax.ShapeDtypeStruct((mp, n), jnp.float32),
        grid=(mp // tm,),
        in_specs=[
            pl.BlockSpec((tm, c), lambda i: (i, 0)),
            pl.BlockSpec((1, c), lambda i: (0, 0)),
            pl.BlockSpec((1, c), lambda i: (0, 0)),
            pl.BlockSpec((c, n), lambda i: (0, 0)),
        ],
        out_specs=pl.BlockSpec((tm, n), lambda i: (i, 0)),
        compiler_params=_PARALLEL,
    )(xp, ln_w.reshape(1, c), ln_b.reshape(1, c), w.astype(jnp.bfloat16))
    return out[:m]


def pallas_ln_mlp_residual(x2d, ln_w, ln_b, w1, b1, w2, b2, eps=1e-6):
    tm = _row_tile(x2d.shape[0])
    xp, m = _pad_rows(x2d, tm)
    mp, c = xp.shape
    ch = w1.shape[1]
    out = pl.pallas_call(
        partial(_ln_mlp_res_kernel, eps=eps),
        out_shape=jax.ShapeDtypeStruct((mp, c), jnp.float32),
        grid=(mp // tm,),
        in_specs=[
            pl.BlockSpec((tm, c), lambda i: (i, 0)),
            pl.BlockSpec((1, c), lambda i: (0, 0)),
            pl.BlockSpec((1, c), lambda i: (0, 0)),
            pl.BlockSpec((c, ch), lambda i: (0, 0)),
            pl.BlockSpec((1, ch), lambda i: (0, 0)),
            pl.BlockSpec((ch, c), lambda i: (0, 0)),
            pl.BlockSpec((1, c), lambda i: (0, 0)),
        ],
        out_specs=pl.BlockSpec((tm, c), lambda i: (i, 0)),
        compiler_params=_PARALLEL,
    )(xp, ln_w.reshape(1, c), ln_b.reshape(1, c),
      w1.astype(jnp.bfloat16), b1.reshape(1, ch),
      w2.astype(jnp.bfloat16), b2.reshape(1, c))
    # TODO(synk): for production E>=1024 tile the hidden dim with an
    # accumulator (arbitrary grid axis) to respect v7x's 64 MiB VMEM.
    return out[:m]


def pallas_sdpa(q, k, v):
    # q, k, v: (G, S, D) with G = batch * windows * num_heads
    g, s, d = q.shape
    scale = 1.0 / math.sqrt(d)
    gt = 16 if g >= 16 else g          # groups per grid step
    gp = _round_up(g, gt)
    if gp != g:
        pad = ((0, gp - g), (0, 0), (0, 0))
        q, k, v = jnp.pad(q, pad), jnp.pad(k, pad), jnp.pad(v, pad)
    out = pl.pallas_call(
        partial(_attn_kernel, scale=scale),
        out_shape=jax.ShapeDtypeStruct((gp, s, d), jnp.float32),
        grid=(gp // gt,),
        in_specs=[
            pl.BlockSpec((gt, s, d), lambda i: (i, 0, 0)),
            pl.BlockSpec((gt, s, d), lambda i: (i, 0, 0)),
            pl.BlockSpec((gt, s, d), lambda i: (i, 0, 0)),
        ],
        out_specs=pl.BlockSpec((gt, s, d), lambda i: (i, 0, 0)),
        compiler_params=_PARALLEL,
    )(q, k, v)
    return out[:g]


# ------------------------- JAX glue (reshapes / padding) -------------------------

def window_partition(x, ws):
    B, H, W, C = x.shape
    pad_h = (ws - H % ws) % ws
    pad_w = (ws - W % ws) % ws
    if pad_h or pad_w:
        x = jnp.pad(x, ((0, 0), (0, pad_h), (0, pad_w), (0, 0)))
    Hp, Wp = H + pad_h, W + pad_w
    x = x.reshape(B, Hp // ws, ws, Wp // ws, ws, C)
    windows = x.transpose(0, 1, 3, 2, 4, 5).reshape(-1, ws, ws, C)
    return windows, (Hp, Wp)


def window_unpartition(windows, ws, pad_hw, hw):
    Hp, Wp = pad_hw
    H, W = hw
    B = windows.shape[0] // ((Hp // ws) * (Wp // ws))
    x = windows.reshape(B, Hp // ws, Wp // ws, ws, ws, -1)
    x = x.transpose(0, 1, 3, 2, 4, 5).reshape(B, Hp, Wp, -1)
    return x[:, :H, :W, :]


def get_abs_pos(abs_pos, has_cls_token, hw):
    h, w = hw
    if has_cls_token:
        abs_pos = abs_pos[:, 1:]
    num = abs_pos.shape[1]
    size = int(math.sqrt(num))
    assert size * size == num
    pe = abs_pos.reshape(1, size, size, -1)
    if size != h or size != w:
        # TODO(synk): F.interpolate(bicubic) alignment differs slightly from jax.image.resize
        pe = jax.image.resize(pe, (1, h, w, pe.shape[-1]), method="bicubic")
    return pe


# ------------------------- Model forward -------------------------

def block_forward(x, p, window_size, num_heads):
    B, H, W, C = x.shape
    hd = C // num_heads
    shortcut = x

    # fused LayerNorm1 + QKV projection (bias added after window partition so
    # zero-padded window tokens end up as qkv(0) = qkv_bias, matching PyTorch)
    qkv = pallas_ln_linear(x.reshape(-1, C), p["norm1_w"], p["norm1_b"], p["qkv_w"])
    qkv = qkv.reshape(B, H, W, 3 * C)

    if window_size > 0:
        qkv, pad_hw = window_partition(qkv, window_size)   # (Bn, ws, ws, 3C)
        Bn, h, w = qkv.shape[0], window_size, window_size
    else:
        Bn, h, w = B, H, W
        pad_hw = (H, W)
    qkv = qkv + p["qkv_b"]                                  # broadcast bias

    S = h * w
    qkv = qkv.reshape(Bn, S, 3, num_heads, hd).transpose(2, 0, 3, 1, 4)
    q = qkv[0].reshape(Bn * num_heads, S, hd)
    k = qkv[1].reshape(Bn * num_heads, S, hd)
    v = qkv[2].reshape(Bn * num_heads, S, hd)

    o = pallas_sdpa(q, k, v)                                # (Bn*nh, S, hd)
    o = (o.reshape(Bn, num_heads, h, w, hd)
           .transpose(0, 2, 3, 1, 4)
           .reshape(Bn * S, C))
    o = pallas_linear(o, p["proj_w"], p["proj_b"]).reshape(Bn, h, w, C)

    if window_size > 0:
        o = window_unpartition(o, window_size, pad_hw, (H, W))

    # LayerScale / DropPath / Dropout are identity (init_values=None, rates=0)
    x = shortcut + o

    # fused LayerNorm2 + MLP + residual add
    y = pallas_ln_mlp_residual(
        x.reshape(-1, C), p["norm2_w"], p["norm2_b"],
        p["fc1_w"], p["fc1_b"], p["fc2_w"], p["fc2_b"],
    )
    return y.reshape(B, H, W, C)


def vit_forward(x_nchw, params, cfg):
    B, C, H, W = x_nchw.shape
    p = cfg["patch_size"]
    E = cfg["embed_dim"]
    Hp, Wp = H // p, W // p

    # PatchEmbed: Conv2d(kernel=stride=patch) == per-patch flatten + matmul
    patches = (
        x_nchw.reshape(B, C, Hp, p, Wp, p)
        .transpose(0, 2, 4, 1, 3, 5)              # (B, Hp, Wp, C, p, p)
        .reshape(B * Hp * Wp, C * p * p)
    )
    x = pallas_linear(patches, params["patch_w"], params["patch_b"]).reshape(B, Hp, Wp, E)

    if params["pos_embed"] is not None:
        x = x + get_abs_pos(params["pos_embed"], cfg["pretrain_use_cls_token"], (Hp, Wp))

    full_attn_ids = [i for i in range(cfg["depth"]) if i not in cfg["window_block_indexes"]]
    outputs = []
    for i, bp in enumerate(params["blocks"]):
        ws = cfg["window_size"] if i in cfg["window_block_indexes"] else 0
        x = block_forward(x, bp, ws, cfg["num_heads"])
        if i == full_attn_ids[-1] or (cfg["return_interm_layers"] and i in full_attn_ids):
            outputs.append(x.transpose(0, 3, 1, 2))   # back to NCHW feature maps
    return outputs


# ------------------------- Deterministic parameter init -------------------------

def init_params(key, cfg):
    E = cfg["embed_dim"]
    C = cfg["in_chans"]
    p = cfg["patch_size"]
    hidden = int(E * cfg["mlp_ratio"])
    num_patches = (cfg["pretrain_img_size"] // p) ** 2
    num_positions = num_patches + 1 if cfg["pretrain_use_cls_token"] else num_patches

    keys = jax.random.split(key, 2 + cfg["depth"])

    def w(k, shape, scale=0.02):
        return (scale * jax.random.normal(k, shape)).astype(jnp.float32)

    params = {
        # weights stored in (in_features, out_features) layout for the kernels
        "patch_w": w(keys[0], (C * p * p, E)),
        "patch_b": jnp.zeros((E,), jnp.float32),
        "pos_embed": w(keys[1], (1, num_positions, E)),
        "blocks": [],
    }
    for i in range(cfg["depth"]):
        bk = jax.random.split(keys[2 + i], 4)
        params["blocks"].append({
            "norm1_w": jnp.ones((E,), jnp.float32),
            "norm1_b": jnp.zeros((E,), jnp.float32),
            "qkv_w": w(bk[0], (E, 3 * E)),
            "qkv_b": jnp.zeros((3 * E,), jnp.float32),
            "proj_w": w(bk[1], (E, E)),
            "proj_b": jnp.zeros((E,), jnp.float32),
            "norm2_w": jnp.ones((E,), jnp.float32),
            "norm2_b": jnp.zeros((E,), jnp.float32),
            "fc1_w": w(bk[2], (E, hidden)),
            "fc1_b": jnp.zeros((hidden,), jnp.float32),
            "fc2_w": w(bk[3], (hidden, E)),
            "fc2_b": jnp.zeros((E,), jnp.float32),
        })
    return params


# ------------------------- Main -------------------------

if __name__ == "__main__":
    cfg = dict(
        img_size=32,
        patch_size=8,
        in_chans=3,
        embed_dim=32,
        depth=3,
        num_heads=4,
        mlp_ratio=4.0,
        window_size=2,
        window_block_indexes=(0, 1),   # block 2 is global attention
        pretrain_img_size=32,          # pretrain grid == actual grid (no resize)
        pretrain_use_cls_token=True,
        return_interm_layers=False,
    )

    key = jax.random.PRNGKey(0)
    kx, kp = jax.random.split(key)
    x = jax.random.normal(
        kx, (2, cfg["in_chans"], cfg["img_size"], cfg["img_size"]), jnp.float32
    )
    params = init_params(kp, cfg)

    outs = vit_forward(x, params, cfg)
    outs = jax.block_until_ready(outs)

    grid = cfg["img_size"] // cfg["patch_size"]
    assert len(outs) == 1
    assert outs[0].shape == (2, cfg["embed_dim"], grid, grid)
    assert bool(jnp.all(jnp.isfinite(outs[0])))
    print("KERNEL_OK")
</pallas_src>

<mosaic_0001>
module attributes {stable_mosaic.version = 11 : i64} {
  func.func @_linear_kernel(%arg0: i32, %arg1: memref<32x192xf32, #tpu.memory_space<vmem>>, %arg2: memref<192x32xbf16, #tpu.memory_space<vmem>>, %arg3: memref<1x32xf32, #tpu.memory_space<vmem>>, %arg4: memref<32x32xf32, #tpu.memory_space<vmem>>) attributes {dimension_semantics = [#tpu.dimension_semantics<parallel>], iteration_bounds = array<i64: 1>, scalar_prefetch = 0 : i64, scratch_operands = 0 : i64, tpu.core_type = #tpu.core_type<tc>, window_params = [{transform_indices = @transform_0, window_bounds = array<i64: 32, 192>}, {pipeline_mode = #tpu.pipeline_mode<synchronous>, transform_indices = @transform_1, window_bounds = array<i64: 192, 32>}, {pipeline_mode = #tpu.pipeline_mode<synchronous>, transform_indices = @transform_2, window_bounds = array<i64: 1, 32>}, {transform_indices = @transform_3, window_bounds = array<i64: 32, 32>}]} {
    %c0 = arith.constant 0 : index
    %c0_0 = arith.constant 0 : index
    %0 = vector.load %arg1[%c0, %c0_0] : memref<32x192xf32, #tpu.memory_space<vmem>>, vector<32x192xf32>
    %1 = arith.truncf %0 : vector<32x192xf32> to vector<32x192xbf16>
    %c0_1 = arith.constant 0 : index
    %c0_2 = arith.constant 0 : index
    %2 = vector.load %arg2[%c0_1, %c0_2] : memref<192x32xbf16, #tpu.memory_space<vmem>>, vector<192x32xbf16>
    %cst = arith.constant dense<0.000000e+00> : vector<32x32xf32>
    %3 = tpu.matmul %1, %2, %cst {dimension_numbers = #tpu.dot_dimension_numbers<[1], [0], [0], [1], [0, 0, 1, 1], [], []>} : vector<32x192xbf16>, vector<192x32xbf16>, vector<32x32xf32> -> vector<32x32xf32>
    %c0_3 = arith.constant 0 : index
    %c0_4 = arith.constant 0 : index
    %4 = vector.load %arg3[%c0_3, %c0_4] : memref<1x32xf32, #tpu.memory_space<vmem>>, vector<1x32xf32>
    %5 = vector.broadcast %4 : vector<1x32xf32> to vector<32x32xf32>
    %6 = arith.addf %3, %5 : vector<32x32xf32>
    %c0_5 = arith.constant 0 : index
    %c0_6 = arith.constant 0 : index
    %7 = vector.load %arg4[%c0_5, %c0_6] : memref<32x32xf32, #tpu.memory_space<vmem>>, vector<32x32xf32>
    tpu.vector_store %arg4[%c0_5, %c0_6], %6 {strides = array<i32>} : memref<32x32xf32, #tpu.memory_space<vmem>>, vector<32x32xf32>,
    return
  }
  func.func @transform_0(%arg0: i32) -> (i32, i32) {
    %c0_i32 = arith.constant 0 : i32
    %c0_i32_0 = arith.constant 0 : i32
    return %arg0, %c0_i32 : i32, i32
  }
  func.func @transform_1(%arg0: i32) -> (i32, i32) {
    %c0_i32 = arith.constant 0 : i32
    %c0_i32_0 = arith.constant 0 : i32
    %c0_i32_1 = arith.constant 0 : i32
    return %c0_i32, %c0_i32_0 : i32, i32
  }
  func.func @transform_2(%arg0: i32) -> (i32, i32) {
    %c0_i32 = arith.constant 0 : i32
    %c0_i32_0 = arith.constant 0 : i32
    %c0_i32_1 = arith.constant 0 : i32
    return %c0_i32, %c0_i32_0 : i32, i32
  }
  func.func @transform_3(%arg0: i32) -> (i32, i32) {
    %c0_i32 = arith.constant 0 : i32
    %c0_i32_0 = arith.constant 0 : i32
    return %arg0, %c0_i32 : i32, i32
  }
}

</mosaic_0001>

<bundles_post_ra>
// kernel: tpu_custom_call.1
= control target key start
LH: loop header
LB: loop body
LE: loop exit
PB: predicated region body
PF: predicated region fallthrough
CT: control target
= control target key end

     0   :  { %v285_v1 = vmov 0   ;;  %vm131_vm0 = vcmask 523264   ;;  %s403_s0 = inlined_call_operand.vmem [shape: f32[32,192], index: 0, kind: input, shape index: {}]   ;;  %s404_s1 = inlined_call_operand.vmem [shape: bf16[192,32], index: 1, kind: input, shape index: {}]   ;;  %s405_s2 = inlined_call_operand.vmem [shape: f32[1,32], index: 2, kind: input, shape index: {}]   ;;  %s406_s3 = inlined_call_operand.hbm [shape: f32[32,32], index: 3, kind: output, shape index: {}]  }
   0x1   :  { %v251_v0 = vld [vmem:[%s404_s1 + $0x38] sm:$0xff]   ;;  %138 = vmatprep.subr.bf16.mxu0 %v285_v1  ;;  %223 = vmatprep.subr.bf16.mxu1 %v285_v1  ;;  %v252_v2 = vld [vmem:[%s404_s1 + $0x30] sm:$0xff]   ;;  %v253_v3 = vld [vmem:[%s404_s1 + $0x28] sm:$0xff]  }
   0x2   :  { %139 = vmatpush1.bf16.msra.mxu0 %v251_v0  ;;  %235 = vmatpush1.bf16.msra.mxu1 %v251_v0  ;;  %v254_v4 = vld [vmem:[%s404_s1 + $0x20] sm:$0xff]   ;;  %v17_v5 = vld [vmem:[%s403_s0 + $0x8] sm:$0xff]  ;;  %v19_v6 = vld [vmem:[%s403_s0 + $0x18] sm:$0xff] }
   0x3   :  { %140 = vmatprep.subr.bf16.mxu0 %v285_v1  ;;  %224 = vmatprep.subr.bf16.mxu1 %v285_v1  ;;  %v21_v7 = vld [vmem:[%s403_s0 + $0x28] sm:$0xff]  ;;  %v25_v8 = vpack.c.bf16 %v19_v6, %v17_v5  ;;  %v23_v9 = vld [vmem:[%s403_s0 + $0x38] sm:$0xff] }
   0x4   :  { %v255_v10 = vld [vmem:[%s404_s1 + $0x18] sm:$0xff]   ;;  %v27_v11 = vpack.c.bf16 %v23_v9, %v21_v7 }
   0x6   :  { %141 = vmatpush1.bf16.msra.mxu0 %v252_v2  ;;  %236 = vmatpush1.bf16.msra.mxu1 %v252_v2 }
   0x7   :  { %142 = vmatprep.subr.bf16.mxu0 %v285_v1  ;;  %225 = vmatprep.subr.bf16.mxu1 %v285_v1 }
   0xa   :  { %143 = vmatpush1.bf16.msra.mxu0 %v253_v3  ;;  %237 = vmatpush1.bf16.msra.mxu1 %v253_v3 }
   0xb   :  { %144 = vmatprep.subr.bf16.mxu0 %v285_v1  ;;  %226 = vmatprep.subr.bf16.mxu1 %v285_v1 }
   0xe   :  { %145 = vmatpush1.bf16.msra.mxu0 %v254_v4  ;;  %238 = vmatpush1.bf16.msra.mxu1 %v254_v4 }
   0xf   :  { %146 = vmatprep.subr.bf16.mxu0 %v285_v1  ;;  %227 = vmatprep.subr.bf16.mxu1 %v285_v1 }
  0x10   :  { %8 = vsyncpa [#allocation3], 0  ;;  %221 = vmatprep.mubr.msk.bf16.mxu0 %vm131_vm0, %v25_v8  ;;  %222 = vmatprep.mubr.msk.bf16.mxu1 %vm131_vm0, %v27_v11  ;;  %v256_v12 = vld [vmem:[%s404_s1 + $0x10] sm:$0xff]   ;;  %v257_v13 = vld [vmem:[%s404_s1 + $0x8] sm:$0xff]   ;;  %vm187_vm1 = vcmask 261120  }
  0x11   :  { %v258_v14 = vld [vmem:[%s404_s1] sm:$0xff]   ;;  %v259_v15 = vld [vmem:[%s404_s1 + $0x58] sm:$0xff]   ;;  %v260_v16 = vld [vmem:[%s404_s1 + $0x50] sm:$0xff]  }
  0x12   :  { %147 = vmatpush1.bf16.msra.mxu0 %v255_v10  ;;  %239 = vmatpush1.bf16.msra.mxu1 %v255_v10  ;;  %v261_v17 = vld [vmem:[%s404_s1 + $0x48] sm:$0xff]   ;;  %v262_v18 = vld [vmem:[%s404_s1 + $0x40] sm:$0xff]   ;;  %v18_v20 = vld [vmem:[%s403_s0 + $0x10] sm:$0xff] }
  0x13   :  { %148 = vmatprep.subr.bf16.mxu0 %v285_v1  ;;  %228 = vmatprep.subr.bf16.mxu1 %v285_v1  ;;  %v16_v19 = vld [vmem:[%s403_s0] sm:$0xff]  ;;  %v22_v22 = vld [vmem:[%s403_s0 + $0x30] sm:$0xff] }
  0x14   :  { %v20_v21 = vld [vmem:[%s403_s0 + $0x20] sm:$0xff]  ;;  %v24_v23 = vpack.c.bf16 %v18_v20, %v16_v19  ;;  %s286_s0 = smov [#allocation2]  }
  0x15   :  { %v26_v24 = vpack.c.bf16 %v22_v22, %v20_v21  ;;  %v208_v25 = vld [vmem:[%s405_s2] ss:$0 sm:$0xff]  ;;  %s197_s26 = sshll.u32 %s286_s0, 4  ;;  %s198_s26 = int_to_ptr.vmem [resolvable:$true] %s197_s26 }
  0x16   :  { %149 = vmatpush1.bf16.msra.mxu0 %v256_v12  ;;  %240 = vmatpush1.bf16.msra.mxu1 %v256_v12  ;;  %s263_s2 = scalar_lea.vmem %s198_s26, 512  ;;  %p268_p1 = scmp.lt.s32.totalorder %s198_s26, %s198_s26 }
  0x17   :  { %150 = vmatprep.subr.bf16.mxu0 %v285_v1  ;;  %229 = vmatprep.subr.bf16.mxu1 %v285_v1  ;;  %p264_p0 = scmp.ne.s32.totalorder %s198_s26, %s263_s2  ;;  %p269_p2 = scmp.lt.s32.totalorder %s263_s2, %s263_s2 }
  0x19   :  { %p270_p3 = por %p269_p2, %p268_p1 }
  0x1a   :  { %151 = vmatpush1.bf16.msra.mxu0 %v257_v13  ;;  %241 = vmatpush1.bf16.msra.mxu1 %v257_v13 }
  0x1b   :  { %152 = vmatprep.subr.bf16.mxu0 %v285_v1  ;;  %230 = vmatprep.subr.bf16.mxu1 %v285_v1  ;;  %p271_p4 = pnand %p270_p3, %p264_p0 }
  0x1e   :  { %153 = vmatpush1.bf16.msra.mxu0 %v258_v14  ;;  %242 = vmatpush1.bf16.msra.mxu1 %v258_v14 }
  0x1f   :  { %162 = vmatprep.subr.bf16.mxu0 %v285_v1  ;;  %231 = vmatprep.subr.bf16.mxu1 %v285_v1 }
  0x22   :  { %163 = vmatpush2.bf16.msra.mxu0 %v259_v15  ;;  %243 = vmatpush2.bf16.msra.mxu1 %v259_v15 }
  0x23   :  { %164 = vmatprep.subr.bf16.mxu0 %v285_v1  ;;  %232 = vmatprep.subr.bf16.mxu1 %v285_v1 }
  0x26   :  { %165 = vmatpush2.bf16.msra.mxu0 %v260_v16  ;;  %244 = vmatpush2.bf16.msra.mxu1 %v260_v16 }
  0x27   :  { %166 = vmatprep.subr.bf16.mxu0 %v285_v1  ;;  %233 = vmatprep.subr.bf16.mxu1 %v285_v1 }
  0x2a   :  { %167 = vmatpush2.bf16.msra.mxu0 %v261_v17  ;;  %245 = vmatpush2.bf16.msra.mxu1 %v261_v17 }
  0x2b   :  { %168 = vmatprep.subr.bf16.mxu0 %v285_v1  ;;  %234 = vmatprep.subr.bf16.mxu1 %v285_v1 }
  0x2e   :  { %169 = vmatpush2.bf16.msra.mxu0 %v262_v18  ;;  %246 = vmatpush2.bf16.msra.mxu1 %v262_v18 }
  0x31   :  { %171 = vmatmul.mubr.bf16.vlgmr.msra.gmra.mxu0 %v24_v23  ;;  %179 = vmatmul.mubr.bf16.vlgmr.msra.gmra.mxu1 %v26_v24 }
  0xf1   :  { %v172_v26 = vpop.f32.mrf.mxu0  ;;  %v180_v27 = vpop.f32.mrf.mxu1 }
  0xf2   :  { %v173_v28 = vadd.f32 %v208_v25, %v172_v26  ;;  %v181_v29 = vadd.f32 %v208_v25, %v180_v27 }
  0xf3   :  { %v174_v30 = vpop.f32.mrf.mxu0  ;;  %v182_v31 = vpop.f32.mrf.mxu1 }
  0xf4   :  { %188 = vst.msk [vmem:[#allocation2] sm:$0xff] %vm187_vm1, %v173_v28  ;;  %190 = vst.msk [vmem:[#allocation2 + $0x10] sm:$0xff] %vm187_vm1, %v181_v29 }
  0xf5   :  { %v175_v32 = vpop.f32.mrf.mxu0  ;;  %v183_v33 = vpop.f32.mrf.mxu1 }
  0xf6   :  { %v176_v34 = vadd.f32 %v208_v25, %v175_v32  ;;  %v184_v35 = vadd.f32 %v208_v25, %v183_v33 }
  0xf7   :  { %v177_v36 = vpop.f32.mrf.mxu0  ;;  %v185_v37 = vpop.f32.mrf.mxu1 }
  0xf8   :  { %189 = vst.msk [vmem:[#allocation2 + $0x8] sm:$0xff] %vm187_vm1, %v176_v34  ;;  %191 = vst.msk [vmem:[#allocation2 + $0x18] sm:$0xff] %vm187_vm1, %v184_v35 }
  0xf9   :  { %274 = shalt.err (!%p271_p4)
}
  0xfa   :  { %s287_s27 = smov 128   ;;  %s288_s28 = smov 8  }
  0xfb   :  { %203 = dma.vmem_to_hbm [thread:$0]  %s198_s26, 512, %s406_s3, [#allocation3], %s287_s27, %s287_s27, %s288_s28  }
  0xfc   :  { %283 = dma.done.wait [#allocation3], 512  }
  0xfd   :  { %284 = vsyncadd [#allocation3], 4294966784 }
  0xfe   :  { %207 = vsyncpa [#allocation3], 1 }

</bundles_post_ra>
